<compile_context>
chip_gen: v5e
topology: v5e:2x2
jax: 0.10.0
libtpu: 0.0.40
codegen_flags: <defaults>
</compile_context>

<pallas_src>
import functools

import jax
import jax.numpy as jnp
from jax.experimental import pallas as pl
from jax.experimental.pallas import tpu as pltpu


def _round_up(x, m):
    return (x + m - 1) // m * m


def _device_vmem_cap():
    """Generation-aware VMEM budget: physical VMEM minus ~15% headroom."""
    try:
        phys = int(pltpu.get_tpu_info().vmem_capacity_bytes)
    except Exception:
        phys = 64 * 1024 * 1024  # conservative (v7x-sized) fallback
    return int(phys * 0.85)


def ff_kernel(x_ref, w1s_ref, b1s_ref, w2_ref, b2_ref, w3_ref, b3_ref, o_ref, *, n_pad):
    x = x_ref[...]                                                  # (tm, Kp) bf16

    # Fused first layer + shortcut: x @ [w1 | ws] + [b1 | bs]   (f32 accumulation).
    hs = jnp.dot(x, w1s_ref[...], preferred_element_type=jnp.float32) + b1s_ref[...]
    h = jnp.maximum(hs[:, :n_pad], 0.0)                             # block branch (f32)
    s = hs[:, n_pad:]                                               # linear shortcut (f32)

    h = jnp.dot(h.astype(w2_ref.dtype), w2_ref[...],
                preferred_element_type=jnp.float32) + b2_ref[...]
    h = jnp.maximum(h, 0.0)

    h = jnp.dot(h.astype(w3_ref.dtype), w3_ref[...],
                preferred_element_type=jnp.float32) + b3_ref[...]
    h = jnp.maximum(h, 0.0)

    o_ref[...] = (h + s).astype(o_ref.dtype)


def pack_params(params, *, compute_dtype=jnp.bfloat16):
    """One-time packing (do this OUTSIDE the per-call path for static weights):
    pad feature dims to 128-lane multiples, fuse [w1 | ws], cast weights to bf16."""
    input_dim, dim = params["w1"].shape
    Kp = _round_up(max(input_dim, 1), 128)
    Np = _round_up(max(dim, 1), 128)
    f32 = jnp.float32

    def pad2(a, rows, cols):
        a = jnp.asarray(a, f32)
        return jnp.pad(a, ((0, rows - a.shape[0]), (0, cols - a.shape[1])))

    packed = {
        "w1s": jnp.concatenate([pad2(params["w1"], Kp, Np),
                                pad2(params["ws"], Kp, Np)], axis=1).astype(compute_dtype),
        "b1s": jnp.concatenate([pad2(params["b1"], 1, Np),
                                pad2(params["bs"], 1, Np)], axis=1),   # f32
        "w2": pad2(params["w2"], Np, Np).astype(compute_dtype),
        "b2": pad2(params["b2"], 1, Np),
        "w3": pad2(params["w3"], Np, Np).astype(compute_dtype),
        "b3": pad2(params["b3"], 1, Np),
    }
    meta = {"input_dim": input_dim, "dim": dim, "Kp": Kp, "Np": Np,
            "compute_dtype": compute_dtype}
    return packed, meta


def ff_forward(x, packed, meta, *, tm=512, out_dtype=jnp.float32):
    """x: (M, input_dim). packed/meta from pack_params(). -> (M, dim) in out_dtype."""
    M, input_dim = x.shape
    assert input_dim == meta["input_dim"]
    dim, Kp, Np = meta["dim"], meta["Kp"], meta["Np"]
    compute_dtype = meta["compute_dtype"]

    # Batch tile: multiple of 16 (bf16 sublane packing); capped so the parallel batch
    # axis has >= 2 grid steps when M allows (shards across both v7x TensorCores).
    tm_req = _round_up(tm, 16)
    tm_cap = max(16, _round_up(pl.cdiv(M, 2), 16))
    tm_eff = max(16, min(tm_req, tm_cap))
    grid = (pl.cdiv(M, tm_eff),)

    bpe = jnp.dtype(compute_dtype).itemsize
    out_bpe = jnp.dtype(out_dtype).itemsize

    # VMEM arithmetic: single-buffered weights + double-buffered x/out tiles + f32 temps.
    weight_bytes = (Kp * 2 * Np + 2 * Np * Np) * bpe + 4 * Np * 4
    act_bytes = tm_eff * (2 * Kp * bpe + 2 * Np * out_bpe + 6 * Np * 4)
    needed = int(1.2 * (weight_bytes + act_bytes))
    vmem_cap = _device_vmem_cap()
    # Limit assumes the worst case (double-buffered weights) so the fallback path also fits.
    vmem_limit = min(max(int(1.2 * (2 * weight_bytes + act_bytes)), 32 * 1024 * 1024),
                     vmem_cap)

    if needed > vmem_cap:
        # TODO(synk): implement a K/N-tiled multi-pass Pallas kernel (emit_pipeline over the
        # contraction dims) for dims whose packed weights exceed VMEM (v7x, dim >~ 2k);
        # plain-XLA fallback keeps the call working instead of failing to compile.
        xl = jnp.pad(x.astype(compute_dtype), ((0, 0), (0, Kp - input_dim)))
        hs = jnp.dot(xl, packed["w1s"], preferred_element_type=jnp.float32) + packed["b1s"]
        h = jnp.maximum(hs[:, :Np], 0.0)
        s = hs[:, Np:]
        h = jnp.maximum(jnp.dot(h.astype(compute_dtype), packed["w2"],
                                preferred_element_type=jnp.float32) + packed["b2"], 0.0)
        h = jnp.maximum(jnp.dot(h.astype(compute_dtype), packed["w3"],
                                preferred_element_type=jnp.float32) + packed["b3"], 0.0)
        return (h + s)[:, :dim].astype(out_dtype)

    # K-only zero-pad (cast to compute dtype first); no M padding of x.
    if Kp != input_dim:
        xp = jnp.pad(x.astype(compute_dtype), ((0, 0), (0, Kp - input_dim)))
    else:
        xp = x.astype(compute_dtype)

    flops = 2 * M * (Kp * 2 * Np + 2 * Np * Np)
    bytes_accessed = M * Kp * bpe + M * Np * out_bpe + weight_bytes

    def make_in_specs(single_buffer_weights):
        if single_buffer_weights:
            def wspec(shape):
                # Constant index map: no point double-buffering resident weights.
                return pl.BlockSpec(shape, lambda i: (0, 0),
                                    pipeline_mode=pl.Buffered(1))
        else:
            def wspec(shape):
                return pl.BlockSpec(shape, lambda i: (0, 0))
        return [
            pl.BlockSpec((tm_eff, Kp), lambda i: (i, 0)),   # x tile (double-buffered)
            wspec((Kp, 2 * Np)),                            # [w1 | ws]
            wspec((1, 2 * Np)),                             # [b1 | bs]
            wspec((Np, Np)),                                # w2
            wspec((1, Np)),                                 # b2
            wspec((Np, Np)),                                # w3
            wspec((1, Np)),                                 # b3
        ]

    def run(single_buffer_weights):
        return pl.pallas_call(
            functools.partial(ff_kernel, n_pad=Np),
            out_shape=jax.ShapeDtypeStruct((M, Np), out_dtype),
            grid_spec=pltpu.PrefetchScalarGridSpec(
                num_scalar_prefetch=0,
                grid=grid,
                in_specs=make_in_specs(single_buffer_weights),
                out_specs=pl.BlockSpec((tm_eff, Np), lambda i: (i, 0)),
            ),
            compiler_params=pltpu.CompilerParams(
                dimension_semantics=("parallel",),
                vmem_limit_bytes=vmem_limit,
            ),
            cost_estimate=pl.CostEstimate(flops=flops, transcendentals=0,
                                          bytes_accessed=bytes_accessed),
        )(xp, packed["w1s"], packed["b1s"], packed["w2"], packed["b2"],
          packed["w3"], packed["b3"])

    try:
        out_pad = run(True)
    except Exception:
        # This jax build rejected pipeline_mode=Buffered(1); fall back to default buffering.
        out_pad = run(False)

    return out_pad if Np == dim else out_pad[:, :dim]


def init_params(key, input_dim, dim):
    """Deterministic PyTorch-style (Kaiming-uniform-ish) init, (in, out) layout, f32."""
    ks = jax.random.split(key, 8)

    def lin(kw, kb, fan_in, fan_out):
        bound = 1.0 / jnp.sqrt(fan_in)
        w = jax.random.uniform(kw, (fan_in, fan_out), jnp.float32, -bound, bound)
        b = jax.random.uniform(kb, (1, fan_out), jnp.float32, -bound, bound)
        return w, b

    w1, b1 = lin(ks[0], ks[1], input_dim, dim)
    w2, b2 = lin(ks[2], ks[3], dim, dim)
    w3, b3 = lin(ks[4], ks[5], dim, dim)
    ws, bs = lin(ks[6], ks[7], input_dim, dim)
    return {"w1": w1, "b1": b1, "w2": w2, "b2": b2,
            "w3": w3, "b3": b3, "ws": ws, "bs": bs}


def ff_reference(x, p, compute_dtype=jnp.bfloat16):
    """Mirrors the kernel's mixed precision (bf16 operands, f32 accumulation)."""
    lo = lambda v: v.astype(compute_dtype)
    f32 = jnp.float32
    xl = lo(x)
    h = jnp.maximum(jnp.dot(xl, lo(p["w1"]), preferred_element_type=f32) + p["b1"], 0.0)
    s = jnp.dot(xl, lo(p["ws"]), preferred_element_type=f32) + p["bs"]
    h = jnp.maximum(jnp.dot(lo(h), lo(p["w2"]), preferred_element_type=f32) + p["b2"], 0.0)
    h = jnp.maximum(jnp.dot(lo(h), lo(p["w3"]), preferred_element_type=f32) + p["b3"], 0.0)
    return h + s


if __name__ == "__main__":
    key = jax.random.PRNGKey(0)
    k_x, k_p = jax.random.split(key)

    batch, input_dim, dim = 16, 16, 32
    x = jax.random.normal(k_x, (batch, input_dim), jnp.float32)
    params = init_params(k_p, input_dim, dim)

    packed, meta = pack_params(params)           # one-time packing, outside the hot path
    out = ff_forward(x, packed, meta)
    out = jax.block_until_ready(out)

    ref = ff_reference(x, params)
    assert out.shape == (batch, dim)
    assert jnp.allclose(out, ref, atol=1e-2, rtol=1e-2), "mismatch vs reference"

    print("KERNEL_OK")
</pallas_src>

<mosaic_0001>
module attributes {stable_mosaic.version = 11 : i64} {
  func.func @ff_kernel(%arg0: i32, %arg1: memref<16x128xbf16, #tpu.memory_space<vmem>>, %arg2: memref<128x256xbf16, #tpu.memory_space<vmem>>, %arg3: memref<1x256xf32, #tpu.memory_space<vmem>>, %arg4: memref<128x128xbf16, #tpu.memory_space<vmem>>, %arg5: memref<1x128xf32, #tpu.memory_space<vmem>>, %arg6: memref<128x128xbf16, #tpu.memory_space<vmem>>, %arg7: memref<1x128xf32, #tpu.memory_space<vmem>>, %arg8: memref<16x128xf32, #tpu.memory_space<vmem>>) attributes {dimension_semantics = [#tpu.dimension_semantics<parallel>], iteration_bounds = array<i64: 1>, scalar_prefetch = 0 : i64, scratch_operands = 0 : i64, tpu.core_type = #tpu.core_type<tc>, window_params = [{transform_indices = @transform_0, window_bounds = array<i64: 16, 128>}, {pipeline_mode = #tpu.pipeline_mode<synchronous>, transform_indices = @transform_1, window_bounds = array<i64: 128, 256>}, {pipeline_mode = #tpu.pipeline_mode<synchronous>, transform_indices = @transform_2, window_bounds = array<i64: 1, 256>}, {pipeline_mode = #tpu.pipeline_mode<synchronous>, transform_indices = @transform_3, window_bounds = array<i64: 128, 128>}, {pipeline_mode = #tpu.pipeline_mode<synchronous>, transform_indices = @transform_4, window_bounds = array<i64: 1, 128>}, {pipeline_mode = #tpu.pipeline_mode<synchronous>, transform_indices = @transform_5, window_bounds = array<i64: 128, 128>}, {pipeline_mode = #tpu.pipeline_mode<synchronous>, transform_indices = @transform_6, window_bounds = array<i64: 1, 128>}, {transform_indices = @transform_7, window_bounds = array<i64: 16, 128>}]} {
    %c0 = arith.constant 0 : index
    %c0_0 = arith.constant 0 : index
    %0 = vector.load %arg1[%c0, %c0_0] : memref<16x128xbf16, #tpu.memory_space<vmem>>, vector<16x128xbf16>
    %c0_1 = arith.constant 0 : index
    %c0_2 = arith.constant 0 : index
    %1 = vector.load %arg2[%c0_1, %c0_2] : memref<128x256xbf16, #tpu.memory_space<vmem>>, vector<128x256xbf16>
    %cst = arith.constant dense<0.000000e+00> : vector<16x256xf32>
    %2 = tpu.matmul %0, %1, %cst {dimension_numbers = #tpu.dot_dimension_numbers<[1], [0], [0], [1], [0, 0, 1, 1], [], []>} : vector<16x128xbf16>, vector<128x256xbf16>, vector<16x256xf32> -> vector<16x256xf32>
    %c0_3 = arith.constant 0 : index
    %c0_4 = arith.constant 0 : index
    %3 = vector.load %arg3[%c0_3, %c0_4] : memref<1x256xf32, #tpu.memory_space<vmem>>, vector<1x256xf32>
    %4 = vector.broadcast %3 : vector<1x256xf32> to vector<16x256xf32>
    %5 = arith.addf %2, %4 : vector<16x256xf32>
    %6 = vector.extract_strided_slice %5 {offsets = [0, 0], sizes = [16, 128], strides = [1, 1]} : vector<16x256xf32> to vector<16x128xf32>
    %cst_5 = arith.constant 0.000000e+00 : f32
    %7 = vector.broadcast %cst_5 : f32 to vector<16x128xf32>
    %8 = arith.maximumf %6, %7 : vector<16x128xf32>
    %9 = vector.extract_strided_slice %5 {offsets = [0, 128], sizes = [16, 128], strides = [1, 1]} : vector<16x256xf32> to vector<16x128xf32>
    %10 = arith.truncf %8 : vector<16x128xf32> to vector<16x128xbf16>
    %c0_6 = arith.constant 0 : index
    %c0_7 = arith.constant 0 : index
    %11 = vector.load %arg4[%c0_6, %c0_7] : memref<128x128xbf16, #tpu.memory_space<vmem>>, vector<128x128xbf16>
    %cst_8 = arith.constant dense<0.000000e+00> : vector<16x128xf32>
    %12 = tpu.matmul %10, %11, %cst_8 {dimension_numbers = #tpu.dot_dimension_numbers<[1], [0], [0], [1], [0, 0, 1, 1], [], []>} : vector<16x128xbf16>, vector<128x128xbf16>, vector<16x128xf32> -> vector<16x128xf32>
    %c0_9 = arith.constant 0 : index
    %c0_10 = arith.constant 0 : index
    %13 = vector.load %arg5[%c0_9, %c0_10] : memref<1x128xf32, #tpu.memory_space<vmem>>, vector<1x128xf32>
    %14 = vector.broadcast %13 : vector<1x128xf32> to vector<16x128xf32>
    %15 = arith.addf %12, %14 : vector<16x128xf32>
    %cst_11 = arith.constant 0.000000e+00 : f32
    %16 = vector.broadcast %cst_11 : f32 to vector<16x128xf32>
    %17 = arith.maximumf %15, %16 : vector<16x128xf32>
    %18 = arith.truncf %17 : vector<16x128xf32> to vector<16x128xbf16>
    %c0_12 = arith.constant 0 : index
    %c0_13 = arith.constant 0 : index
    %19 = vector.load %arg6[%c0_12, %c0_13] : memref<128x128xbf16, #tpu.memory_space<vmem>>, vector<128x128xbf16>
    %cst_14 = arith.constant dense<0.000000e+00> : vector<16x128xf32>
    %20 = tpu.matmul %18, %19, %cst_14 {dimension_numbers = #tpu.dot_dimension_numbers<[1], [0], [0], [1], [0, 0, 1, 1], [], []>} : vector<16x128xbf16>, vector<128x128xbf16>, vector<16x128xf32> -> vector<16x128xf32>
    %c0_15 = arith.constant 0 : index
    %c0_16 = arith.constant 0 : index
    %21 = vector.load %arg7[%c0_15, %c0_16] : memref<1x128xf32, #tpu.memory_space<vmem>>, vector<1x128xf32>
    %22 = vector.broadcast %21 : vector<1x128xf32> to vector<16x128xf32>
    %23 = arith.addf %20, %22 : vector<16x128xf32>
    %cst_17 = arith.constant 0.000000e+00 : f32
    %24 = vector.broadcast %cst_17 : f32 to vector<16x128xf32>
    %25 = arith.maximumf %23, %24 : vector<16x128xf32>
    %26 = arith.addf %25, %9 : vector<16x128xf32>
    %c0_18 = arith.constant 0 : index
    %c0_19 = arith.constant 0 : index
    %27 = vector.load %arg8[%c0_18, %c0_19] : memref<16x128xf32, #tpu.memory_space<vmem>>, vector<16x128xf32>
    tpu.vector_store %arg8[%c0_18, %c0_19], %26 {strides = array<i32>} : memref<16x128xf32, #tpu.memory_space<vmem>>, vector<16x128xf32>,
    return
  }
  func.func @transform_0(%arg0: i32) -> (i32, i32) {
    %c0_i32 = arith.constant 0 : i32
    %c0_i32_0 = arith.constant 0 : i32
    return %arg0, %c0_i32 : i32, i32
  }
  func.func @transform_1(%arg0: i32) -> (i32, i32) {
    %c0_i32 = arith.constant 0 : i32
    %c0_i32_0 = arith.constant 0 : i32
    %c0_i32_1 = arith.constant 0 : i32
    return %c0_i32, %c0_i32_0 : i32, i32
  }
  func.func @transform_2(%arg0: i32) -> (i32, i32) {
    %c0_i32 = arith.constant 0 : i32
    %c0_i32_0 = arith.constant 0 : i32
    %c0_i32_1 = arith.constant 0 : i32
    return %c0_i32, %c0_i32_0 : i32, i32
  }
  func.func @transform_3(%arg0: i32) -> (i32, i32) {
    %c0_i32 = arith.constant 0 : i32
    %c0_i32_0 = arith.constant 0 : i32
    %c0_i32_1 = arith.constant 0 : i32
    return %c0_i32, %c0_i32_0 : i32, i32
  }
  func.func @transform_4(%arg0: i32) -> (i32, i32) {
    %c0_i32 = arith.constant 0 : i32
    %c0_i32_0 = arith.constant 0 : i32
    %c0_i32_1 = arith.constant 0 : i32
    return %c0_i32, %c0_i32_0 : i32, i32
  }
  func.func @transform_5(%arg0: i32) -> (i32, i32) {
    %c0_i32 = arith.constant 0 : i32
    %c0_i32_0 = arith.constant 0 : i32
    %c0_i32_1 = arith.constant 0 : i32
    return %c0_i32, %c0_i32_0 : i32, i32
  }
  func.func @transform_6(%arg0: i32) -> (i32, i32) {
    %c0_i32 = arith.constant 0 : i32
    %c0_i32_0 = arith.constant 0 : i32
    %c0_i32_1 = arith.constant 0 : i32
    return %c0_i32, %c0_i32_0 : i32, i32
  }
  func.func @transform_7(%arg0: i32) -> (i32, i32) {
    %c0_i32 = arith.constant 0 : i32
    %c0_i32_0 = arith.constant 0 : i32
    return %arg0, %c0_i32 : i32, i32
  }
}

module attributes {stable_mosaic.version = 11 : i64} {
  func.func @ff_kernel(%arg0: i32, %arg1: memref<16x128xbf16, #tpu.memory_space<vmem>>, %arg2: memref<128x256xbf16, #tpu.memory_space<vmem>>, %arg3: memref<1x256xf32, #tpu.memory_space<vmem>>, %arg4: memref<128x128xbf16, #tpu.memory_space<vmem>>, %arg5: memref<1x128xf32, #tpu.memory_space<vmem>>, %arg6: memref<128x128xbf16, #tpu.memory_space<vmem>>, %arg7: memref<1x128xf32, #tpu.memory_space<vmem>>, %arg8: memref<16x128xf32, #tpu.memory_space<vmem>>) attributes {dimension_semantics = [#tpu.dimension_semantics<parallel>], iteration_bounds = array<i64: 1>, scalar_prefetch = 0 : i64, scratch_operands = 0 : i64, tpu.core_type = #tpu.core_type<tc>, window_params = [{transform_indices = @transform_0, window_bounds = array<i64: 16, 128>}, {pipeline_mode = #tpu.pipeline_mode<synchronous>, transform_indices = @transform_1, window_bounds = array<i64: 128, 256>}, {pipeline_mode = #tpu.pipeline_mode<synchronous>, transform_indices = @transform_2, window_bounds = array<i64: 1, 256>}, {pipeline_mode = #tpu.pipeline_mode<synchronous>, transform_indices = @transform_3, window_bounds = array<i64: 128, 128>}, {pipeline_mode = #tpu.pipeline_mode<synchronous>, transform_indices = @transform_4, window_bounds = array<i64: 1, 128>}, {pipeline_mode = #tpu.pipeline_mode<synchronous>, transform_indices = @transform_5, window_bounds = array<i64: 128, 128>}, {pipeline_mode = #tpu.pipeline_mode<synchronous>, transform_indices = @transform_6, window_bounds = array<i64: 1, 128>}, {transform_indices = @transform_7, window_bounds = array<i64: 16, 128>}]} {
    %c0 = arith.constant 0 : index
    %c0_0 = arith.constant 0 : index
    %0 = vector.load %arg1[%c0, %c0_0] : memref<16x128xbf16, #tpu.memory_space<vmem>>, vector<16x128xbf16>
    %c0_1 = arith.constant 0 : index
    %c0_2 = arith.constant 0 : index
    %1 = vector.load %arg2[%c0_1, %c0_2] : memref<128x256xbf16, #tpu.memory_space<vmem>>, vector<128x256xbf16>
    %cst = arith.constant dense<0.000000e+00> : vector<16x256xf32>
    %2 = tpu.matmul %0, %1, %cst {dimension_numbers = #tpu.dot_dimension_numbers<[1], [0], [0], [1], [0, 0, 1, 1], [], []>} : vector<16x128xbf16>, vector<128x256xbf16>, vector<16x256xf32> -> vector<16x256xf32>
    %c0_3 = arith.constant 0 : index
    %c0_4 = arith.constant 0 : index
    %3 = vector.load %arg3[%c0_3, %c0_4] : memref<1x256xf32, #tpu.memory_space<vmem>>, vector<1x256xf32>
    %4 = vector.broadcast %3 : vector<1x256xf32> to vector<16x256xf32>
    %5 = arith.addf %2, %4 : vector<16x256xf32>
    %6 = vector.extract_strided_slice %5 {offsets = [0, 0], sizes = [16, 128], strides = [1, 1]} : vector<16x256xf32> to vector<16x128xf32>
    %cst_5 = arith.constant 0.000000e+00 : f32
    %7 = vector.broadcast %cst_5 : f32 to vector<16x128xf32>
    %8 = arith.maximumf %6, %7 : vector<16x128xf32>
    %9 = vector.extract_strided_slice %5 {offsets = [0, 128], sizes = [16, 128], strides = [1, 1]} : vector<16x256xf32> to vector<16x128xf32>
    %10 = arith.truncf %8 : vector<16x128xf32> to vector<16x128xbf16>
    %c0_6 = arith.constant 0 : index
    %c0_7 = arith.constant 0 : index
    %11 = vector.load %arg4[%c0_6, %c0_7] : memref<128x128xbf16, #tpu.memory_space<vmem>>, vector<128x128xbf16>
    %cst_8 = arith.constant dense<0.000000e+00> : vector<16x128xf32>
    %12 = tpu.matmul %10, %11, %cst_8 {dimension_numbers = #tpu.dot_dimension_numbers<[1], [0], [0], [1], [0, 0, 1, 1], [], []>} : vector<16x128xbf16>, vector<128x128xbf16>, vector<16x128xf32> -> vector<16x128xf32>
    %c0_9 = arith.constant 0 : index
    %c0_10 = arith.constant 0 : index
    %13 = vector.load %arg5[%c0_9, %c0_10] : memref<1x128xf32, #tpu.memory_space<vmem>>, vector<1x128xf32>
    %14 = vector.broadcast %13 : vector<1x128xf32> to vector<16x128xf32>
    %15 = arith.addf %12, %14 : vector<16x128xf32>
    %cst_11 = arith.constant 0.000000e+00 : f32
    %16 = vector.broadcast %cst_11 : f32 to vector<16x128xf32>
    %17 = arith.maximumf %15, %16 : vector<16x128xf32>
    %18 = arith.truncf %17 : vector<16x128xf32> to vector<16x128xbf16>
    %c0_12 = arith.constant 0 : index
    %c0_13 = arith.constant 0 : index
    %19 = vector.load %arg6[%c0_12, %c0_13] : memref<128x128xbf16, #tpu.memory_space<vmem>>, vector<128x128xbf16>
    %cst_14 = arith.constant dense<0.000000e+00> : vector<16x128xf32>
    %20 = tpu.matmul %18, %19, %cst_14 {dimension_numbers = #tpu.dot_dimension_numbers<[1], [0], [0], [1], [0, 0, 1, 1], [], []>} : vector<16x128xbf16>, vector<128x128xbf16>, vector<16x128xf32> -> vector<16x128xf32>
    %c0_15 = arith.constant 0 : index
    %c0_16 = arith.constant 0 : index
    %21 = vector.load %arg7[%c0_15, %c0_16] : memref<1x128xf32, #tpu.memory_space<vmem>>, vector<1x128xf32>
    %22 = vector.broadcast %21 : vector<1x128xf32> to vector<16x128xf32>
    %23 = arith.addf %20, %22 : vector<16x128xf32>
    %cst_17 = arith.constant 0.000000e+00 : f32
    %24 = vector.broadcast %cst_17 : f32 to vector<16x128xf32>
    %25 = arith.maximumf %23, %24 : vector<16x128xf32>
    %26 = arith.addf %25, %9 : vector<16x128xf32>
    %c0_18 = arith.constant 0 : index
    %c0_19 = arith.constant 0 : index
    %27 = vector.load %arg8[%c0_18, %c0_19] : memref<16x128xf32, #tpu.memory_space<vmem>>, vector<16x128xf32>
    tpu.vector_store %arg8[%c0_18, %c0_19], %26 {strides = array<i32>} : memref<16x128xf32, #tpu.memory_space<vmem>>, vector<16x128xf32>,
    return
  }
  func.func @transform_0(%arg0: i32) -> (i32, i32) {
    %c0_i32 = arith.constant 0 : i32
    %c0_i32_0 = arith.constant 0 : i32
    return %arg0, %c0_i32 : i32, i32
  }
  func.func @transform_1(%arg0: i32) -> (i32, i32) {
    %c0_i32 = arith.constant 0 : i32
    %c0_i32_0 = arith.constant 0 : i32
    %c0_i32_1 = arith.constant 0 : i32
    return %c0_i32, %c0_i32_0 : i32, i32
  }
  func.func @transform_2(%arg0: i32) -> (i32, i32) {
    %c0_i32 = arith.constant 0 : i32
    %c0_i32_0 = arith.constant 0 : i32
    %c0_i32_1 = arith.constant 0 : i32
    return %c0_i32, %c0_i32_0 : i32, i32
  }
  func.func @transform_3(%arg0: i32) -> (i32, i32) {
    %c0_i32 = arith.constant 0 : i32
    %c0_i32_0 = arith.constant 0 : i32
    %c0_i32_1 = arith.constant 0 : i32
    return %c0_i32, %c0_i32_0 : i32, i32
  }
  func.func @transform_4(%arg0: i32) -> (i32, i32) {
    %c0_i32 = arith.constant 0 : i32
    %c0_i32_0 = arith.constant 0 : i32
    %c0_i32_1 = arith.constant 0 : i32
    return %c0_i32, %c0_i32_0 : i32, i32
  }
  func.func @transform_5(%arg0: i32) -> (i32, i32) {
    %c0_i32 = arith.constant 0 : i32
    %c0_i32_0 = arith.constant 0 : i32
    %c0_i32_1 = arith.constant 0 : i32
    return %c0_i32, %c0_i32_0 : i32, i32
  }
  func.func @transform_6(%arg0: i32) -> (i32, i32) {
    %c0_i32 = arith.constant 0 : i32
    %c0_i32_0 = arith.constant 0 : i32
    %c0_i32_1 = arith.constant 0 : i32
    return %c0_i32, %c0_i32_0 : i32, i32
  }
  func.func @transform_7(%arg0: i32) -> (i32, i32) {
    %c0_i32 = arith.constant 0 : i32
    %c0_i32_0 = arith.constant 0 : i32
    return %arg0, %c0_i32 : i32, i32
  }
}

</mosaic_0001>

<bundles_post_ra>
// kernel: tpu_custom_call.1
= control target key start
LH: loop header
LB: loop body
LE: loop exit
PB: predicated region body
PF: predicated region fallthrough
CT: control target
= control target key end

     0   :  { %12 = vsyncpa [#allocation3], 0  ;;  %s851_s0 = inlined_call_operand.hbm [shape: bf16[16,128], index: 0, kind: input, shape index: {}]   ;;  %s852_s1 = inlined_call_operand.hbm [shape: bf16[128,256], index: 1, kind: input, shape index: {}]   ;;  %s853_s2 = inlined_call_operand.hbm [shape: f32[1,256], index: 2, kind: input, shape index: {}]   ;;  %s854_s3 = inlined_call_operand.hbm [shape: bf16[128,128], index: 3, kind: input, shape index: {}]   ;;  %s855_s4 = inlined_call_operand.vmem [shape: f32[1,128], index: 4, kind: input, shape index: {}]   ;;  %s856_s5 = inlined_call_operand.hbm [shape: bf16[128,128], index: 5, kind: input, shape index: {}]   ;;  %s857_s6 = inlined_call_operand.vmem [shape: f32[1,128], index: 6, kind: input, shape index: {}]   ;;  %s858_s7 = inlined_call_operand.hbm [shape: f32[16,128], index: 7, kind: output, shape index: {}]  }
   0x1   :  { %13 = vsyncpa [#allocation6], 0 }
   0x2   :  { %14 = vsyncpa [#allocation9], 0  ;;  %s33_s26 = sshll.u32 %s852_s1, 4  ;;  %s34_s26 = int_to_ptr.hbm [resolvable:$true] %s33_s26 }
   0x3   :  { %15 = vsyncpa [#allocation4], 0  ;;  %s767_s27 = smov [#allocation5]   ;;  %s768_s29 = smov 128  }
   0x4   :  { %s35_s28 = sshll.u32 %s767_s27, 4  ;;  %s769_s30 = smov 8   ;;  %s36_s28 = int_to_ptr.vmem [resolvable:$true] %s35_s28 }
   0x5   :  { %41 = dma.hbm_to_vmem [thread:$0]  %s34_s26, 2048, %s36_s28, [#allocation6], %s768_s29, %s768_s29, %s769_s30  }
   0x6   :  { %s57_s10 = sshll.u32 %s854_s3, 4  ;;  %s770_s11 = smov [#allocation8]   ;;  %s58_s10 = int_to_ptr.hbm [resolvable:$true] %s57_s10 }
   0x7   :  { %s59_s12 = sshll.u32 %s770_s11, 4  ;;  %s20_s14 = sshll.u32 %s851_s0, 4  ;;  %s60_s12 = int_to_ptr.vmem [resolvable:$true] %s59_s12  ;;  %s21_s14 = int_to_ptr.hbm [resolvable:$true] %s20_s14 }
   0x8   :  { %s771_s15 = smov 64   ;;  %s772_s16 = smov 4  }
   0x9   :  { %65 = dma.hbm_to_vmem [thread:$0]  %s58_s10, 1024, %s60_s12, [#allocation9], %s771_s15, %s771_s15, %s772_s16  }
   0xa   :  { %s47_s19 = sshll.u32 %s853_s2, 4  ;;  %s773_s20 = smov [#allocation2]   ;;  %s48_s19 = int_to_ptr.hbm [resolvable:$true] %s47_s19 }
   0xb   :  { %s22_s21 = sshll.u32 %s773_s20, 4  ;;  %s774_s3 = smov [#allocation7]   ;;  %s23_s21 = int_to_ptr.vmem [resolvable:$true] %s22_s21 }
   0xc   :  { %28 = dma.hbm_to_vmem [thread:$0]  %s21_s14, 128, %s23_s21, [#allocation3], %s771_s15, %s771_s15, %s772_s16  }
   0xd   :  { %s49_s22 = sshll.u32 %s774_s3, 4  ;;  %s72_s0 = sshll.u32 %s856_s5, 4  ;;  %s50_s22 = int_to_ptr.vmem [resolvable:$true] %s49_s22  ;;  %s73_s0 = int_to_ptr.hbm [resolvable:$true] %s72_s0 }
   0xe   :  { %52 = dma.hbm_to_vmem [thread:$0]  %s48_s19, 32, %s50_s22, [#allocation6]  }
   0xf   :  { %s775_s25 = smov [#allocation10]  }
  0x10   :  { %s74_s26 = sshll.u32 %s775_s25, 4  ;;  %s75_s26 = int_to_ptr.vmem [resolvable:$true] %s74_s26 }
  0x11   :  { %80 = dma.hbm_to_vmem [thread:$0]  %s73_s0, 1024, %s75_s26, [#allocation9], %s771_s15, %s771_s15, %s772_s16  }
  0x12   :  { %759 = dma.done.wait [#allocation3], 128  }
  0x13   :  { %760 = vsyncadd [#allocation3], 4294967168 }
  0x14   :  { %761 = dma.done.wait [#allocation6], 2080  }
  0x15   :  { %762 = vsyncadd [#allocation6], 4294965216 }
  0x16   :  { %763 = dma.done.wait [#allocation9], 2048  }
  0x17   :  { %764 = vsyncadd [#allocation9], 4294965248  ;;  %v500_v0 = vld [vmem:[#allocation5 + $0x70] sm:$0xf]  ;;  %v586_v1 = vld [vmem:[#allocation5 + $0x74] sm:$0xf0] }
  0x18   :  { %v492_v2 = vld [vmem:[#allocation5 + $0x60] sm:$0xf]  ;;  %v501_v3 = vor.u32 %v586_v1, %v500_v0  ;;  %v584_v4 = vld [vmem:[#allocation5 + $0x64] sm:$0xf0]  ;;  %v484_v6 = vld [vmem:[#allocation5 + $0x50] sm:$0xf] }
  0x19   :  { %v493_v5 = vor.u32 %v584_v4, %v492_v2  ;;  %v582_v7 = vld [vmem:[#allocation5 + $0x54] sm:$0xf0]  ;;  %v476_v11 = vld [vmem:[#allocation5 + $0x40] sm:$0xf]  ;;  %v580_v12 = vld [vmem:[#allocation5 + $0x44] sm:$0xf0] }
  0x1a   :  { %213 = vmatpush.bf16.msra.mxu0 %v501_v3  ;;  %v594_v8 = vld [vmem:[#allocation8 + $0x38] sm:$0xff]  ;;  %v485_v9 = vor.u32 %v582_v7, %v484_v6  ;;  %v593_v10 = vld [vmem:[#allocation8 + $0x30] sm:$0xff]  ;;  %v477_v13 = vor.u32 %v580_v12, %v476_v11  ;;  %v592_v14 = vld [vmem:[#allocation8 + $0x28] sm:$0xff]  ;;  %s423_s11 = sshll.u32 %s858_s7, 4  ;;  %s424_s11 = int_to_ptr.hbm [resolvable:$true] %s423_s11 }
  0x1b   :  { %312 = vmatpush.bf16.msra.mxu2 %v594_v8  ;;  %v468_v15 = vld [vmem:[#allocation5 + $0x30] sm:$0xf]  ;;  %v578_v16 = vld [vmem:[#allocation5 + $0x34] sm:$0xf0]  ;;  %v591_v18 = vld [vmem:[#allocation8 + $0x20] sm:$0xff] }
  0x1c   :  { %v469_v17 = vor.u32 %v578_v16, %v468_v15  ;;  %v460_v19 = vld [vmem:[#allocation5 + $0x20] sm:$0xf]  ;;  %v576_v20 = vld [vmem:[#allocation5 + $0x24] sm:$0xf0]  ;;  %v452_v22 = vld [vmem:[#allocation5 + $0x10] sm:$0xf] }
  0x1d   :  { %v461_v21 = vor.u32 %v576_v20, %v460_v19  ;;  %v574_v23 = vld [vmem:[#allocation5 + $0x14] sm:$0xf0]  ;;  %v444_v25 = vld [vmem:[#allocation5] sm:$0xf]  ;;  %v572_v26 = vld [vmem:[#allocation5 + $0x4] sm:$0xf0] }
  0x1e   :  { %214 = vmatpush.bf16.msra.mxu0 %v493_v5  ;;  %v453_v24 = vor.u32 %v574_v23, %v452_v22  ;;  %v445_v27 = vor.u32 %v572_v26, %v444_v25  ;;  %v835_v28 = vld [vmem:[#allocation2] sm:$0xff]  ;;  %v588_v31 = vld [vmem:[#allocation8 + $0x8] sm:$0xff]  ;;  %v587_v32 = vld [vmem:[#allocation8] sm:$0xff] }
  0x1f   :  { %313 = vmatpush.bf16.msra.mxu2 %v593_v10  ;;  %v590_v29 = vld [vmem:[#allocation8 + $0x18] sm:$0xff]  ;;  %v589_v30 = vld [vmem:[#allocation8 + $0x10] sm:$0xff]  ;;  %v583_v37 = vld [vmem:[#allocation5 + $0x64] sm:$0xf] }
  0x20   :  { %v585_v33 = vld [vmem:[#allocation5 + $0x74] sm:$0xf]  ;;  %v502_v34 = vld [vmem:[#allocation5 + $0x78] sm:$0xf0]  ;;  %v494_v38 = vld [vmem:[#allocation5 + $0x68] sm:$0xf0] }
  0x21   :  { %v602_v35 = vld [vmem:[#allocation10 + $0x38] sm:$0xff]  ;;  %v505_v36 = vor.u32 %v585_v33, %v502_v34  ;;  %v601_v39 = vld [vmem:[#allocation10 + $0x30] sm:$0xff]  ;;  %v497_v40 = vor.u32 %v583_v37, %v494_v38  ;;  %v600_v43 = vld [vmem:[#allocation10 + $0x28] sm:$0xff] }
  0x22   :  { %215 = vmatpush.bf16.msra.mxu0 %v485_v9  ;;  %397 = vmatpush.bf16.msra.mxu3 %v602_v35  ;;  %v581_v41 = vld [vmem:[#allocation5 + $0x54] sm:$0xf]  ;;  %v486_v42 = vld [vmem:[#allocation5 + $0x58] sm:$0xf0]  ;;  %v579_v45 = vld [vmem:[#allocation5 + $0x44] sm:$0xf] }
  0x23   :  { %314 = vmatpush.bf16.msra.mxu2 %v592_v14  ;;  %227 = vmatpush.bf16.msra.mxu1 %v505_v36  ;;  %v489_v44 = vor.u32 %v581_v41, %v486_v42  ;;  %v478_v46 = vld [vmem:[#allocation5 + $0x48] sm:$0xf0]  ;;  %v599_v47 = vld [vmem:[#allocation10 + $0x20] sm:$0xff]  ;;  %v577_v49 = vld [vmem:[#allocation5 + $0x34] sm:$0xf] }
  0x24   :  { %v481_v48 = vor.u32 %v579_v45, %v478_v46  ;;  %v470_v50 = vld [vmem:[#allocation5 + $0x38] sm:$0xf0]  ;;  %v121_v52 = vld [vmem:[#allocation7] sm:$0x3]  ;;  %v575_v62 = vld [vmem:[#allocation5 + $0x24] sm:$0xf] }
  0x25   :  { %v473_v51 = vor.u32 %v577_v49, %v470_v50  ;;  %v123_v54 = vperm.slane %v121_v52, 0  ;;  %v598_v61 = vld [vmem:[#allocation10 + $0x18] sm:$0xff]  ;;  %v462_v63 = vld [vmem:[#allocation5 + $0x28] sm:$0xf0]  ;;  %v597_v1 = vld [vmem:[#allocation10 + $0x10] sm:$0xff] }
  0x26   :  { %216 = vmatpush.bf16.msra.mxu0 %v477_v13  ;;  %398 = vmatpush.bf16.msra.mxu3 %v601_v39  ;;  %v465_v0 = vor.u32 %v575_v62, %v462_v63  ;;  %v573_v2 = vld [vmem:[#allocation5 + $0x14] sm:$0xf]  ;;  %v454_v3 = vld [vmem:[#allocation5 + $0x18] sm:$0xf0]  ;;  %v596_v5 = vld [vmem:[#allocation10 + $0x8] sm:$0xff] }
  0x27   :  { %315 = vmatpush.bf16.msra.mxu2 %v591_v18  ;;  %228 = vmatpush.bf16.msra.mxu1 %v497_v40  ;;  %v457_v4 = vor.u32 %v573_v2, %v454_v3  ;;  %v571_v6 = vld [vmem:[#allocation5 + $0x4] sm:$0xf]  ;;  %v446_v7 = vld [vmem:[#allocation5 + $0x8] sm:$0xf0]  ;;  %v613_v11 = vld [vmem:[%s855_s4] ss:$0 sm:$0xff] }
  0x28   :  { %v449_v8 = vor.u32 %v571_v6, %v446_v7  ;;  %v595_v9 = vld [vmem:[#allocation10] sm:$0xff]  ;;  %v124_v18 = vperm.slane %v121_v52, 1  ;;  %v614_v19 = vld [vmem:[%s857_s6] ss:$0 sm:$0xff]  ;;  %s776_s4 = smov [#allocation11]  }
  0x29   :  { %s421_s8 = sshll.u32 %s776_s4, 4  ;;  %s422_s8 = int_to_ptr.vmem [resolvable:$true] %s421_s8 }
  0x2a   :  { %217 = vmatpush.bf16.msra.mxu0 %v469_v17  ;;  %399 = vmatpush.bf16.msra.mxu3 %v600_v43 }
  0x2b   :  { %316 = vmatpush.bf16.msra.mxu2 %v590_v29  ;;  %229 = vmatpush.bf16.msra.mxu1 %v489_v44 }
  0x2e   :  { %218 = vmatpush.bf16.msra.mxu0 %v461_v21  ;;  %400 = vmatpush.bf16.msra.mxu3 %v599_v47 }
  0x2f   :  { %317 = vmatpush.bf16.msra.mxu2 %v589_v30  ;;  %230 = vmatpush.bf16.msra.mxu1 %v481_v48 }
  0x32   :  { %219 = vmatpush.bf16.msra.mxu0 %v453_v24  ;;  %401 = vmatpush.bf16.msra.mxu3 %v598_v61 }
  0x33   :  { %318 = vmatpush.bf16.msra.mxu2 %v588_v31  ;;  %231 = vmatpush.bf16.msra.mxu1 %v473_v51 }
  0x36   :  { %220 = vmatpush.bf16.msra.mxu0 %v445_v27  ;;  %402 = vmatpush.bf16.msra.mxu3 %v597_v1 }
  0x37   :  { %319 = vmatpush.bf16.msra.mxu2 %v587_v32  ;;  %232 = vmatpush.bf16.msra.mxu1 %v465_v0 }
  0x39   :  { %221 = vmatmul.bf16.vlgmr.msra.gmra.mxu0 %v835_v28 }
  0x3a   :  { %403 = vmatpush.bf16.msra.mxu3 %v596_v5 }
  0x3b   :  { %233 = vmatpush.bf16.msra.mxu1 %v457_v4 }
  0x3e   :  { %404 = vmatpush.bf16.msra.mxu3 %v595_v9 }
  0x3f   :  { %234 = vmatpush.bf16.msra.mxu1 %v449_v8 }
  0x42   :  { %235 = vmatmul.bf16.vlgmr.msra.gmra.mxu1 %v835_v28 }
  0xb6   :  { %v222_v53 = vpop.f32.mrf.mxu0 }
  0xb7   :  { %v223_v55 = vadd.f32 %v222_v53, %v123_v54 }
  0xb9   :  { %v241_v58 = vmax.f32 %v223_v55, 0.0 }
  0xbe   :  { %v224_v56 = vpop.f32.mrf.mxu0 }
  0xbf   :  { %v225_v57 = vadd.f32 %v224_v56, %v123_v54  ;;  %v236_v20 = vpop.f32.mrf.mxu1 }
  0xc0   :  { %v237_v22 = vadd.f32 %v236_v20, %v124_v18 }
  0xc1   :  { %v242_v59 = vmax.f32 %v225_v57, 0.0 }
  0xc3   :  { %v243_v60 = vpack.c.bf16 %v242_v59, %v241_v58 }
  0xc5   :  { %320 = vmatmul.bf16.vlgmr.msra.gmra.mxu2 %v243_v60 }
  0xc7   :  { %v238_v26 = vpop.f32.mrf.mxu1 }
  0xc8   :  { %v239_v29 = vadd.f32 %v238_v26, %v124_v18 }
 0x148   :  { %v321_v10 = vpop.f32.mrf.mxu2 }
 0x149   :  { %v322_v12 = vadd.f32 %v613_v11, %v321_v10 }
 0x14b   :  { %v326_v15 = vmax.f32 %v322_v12, 0.0 }
 0x150   :  { %v323_v13 = vpop.f32.mrf.mxu2 }
 0x151   :  { %v324_v14 = vadd.f32 %v613_v11, %v323_v13 }
 0x153   :  { %v327_v16 = vmax.f32 %v324_v14, 0.0 }
 0x155   :  { %v328_v17 = vpack.c.bf16 %v327_v16, %v326_v15 }
 0x157   :  { %405 = vmatmul.bf16.vlgmr.msra.gmra.mxu3 %v328_v17 }
 0x1da   :  { %v406_v21 = vpop.f32.mrf.mxu3 }
 0x1db   :  { %v407_v23 = vadd.f32 %v614_v19, %v406_v21 }
 0x1dd   :  { %v411_v24 = vmax.f32 %v407_v23, 0.0 }
 0x1df   :  { %v413_v25 = vadd.f32 %v411_v24, %v237_v22 }
 0x1e1   :  { %415 = vst [vmem:[#allocation11] sm:$0xff] %v413_v25 }
 0x1e2   :  { %v408_v27 = vpop.f32.mrf.mxu3 }
 0x1e3   :  { %v409_v28 = vadd.f32 %v614_v19, %v408_v27 }
 0x1e5   :  { %v412_v30 = vmax.f32 %v409_v28, 0.0 }
 0x1e7   :  { %v414_v31 = vadd.f32 %v412_v30, %v239_v29 }
 0x1e9   :  { %416 = vst [vmem:[#allocation11 + $0x8] sm:$0xff] %v414_v31 }
 0x1ea   :  { %429 = dma.vmem_to_hbm [thread:$0]  %s422_s8, 256, %s424_s11, [#allocation4], %s768_s29, %s768_s29, %s769_s30  }
 0x1eb   :  { %765 = dma.done.wait [#allocation4], 256  }
 0x1ec   :  { %766 = vsyncadd [#allocation4], 4294967040 }
 0x1ed   :  { %434 = vsyncpa [#allocation3], 1 }
 0x1ee   :  { %435 = vsyncpa [#allocation6], 1 }
 0x1ef   :  { %436 = vsyncpa [#allocation9], 1 }
 0x1f0   :  { %437 = vsyncpa [#allocation4], 1 }

// kernel: tpu_custom_call.1
= control target key start
LH: loop header
LB: loop body
LE: loop exit
PB: predicated region body
PF: predicated region fallthrough
CT: control target
= control target key end

     0   :  { %12 = vsyncpa [#allocation3], 0  ;;  %s851_s0 = inlined_call_operand.hbm [shape: bf16[16,128], index: 0, kind: input, shape index: {}]   ;;  %s852_s1 = inlined_call_operand.hbm [shape: bf16[128,256], index: 1, kind: input, shape index: {}]   ;;  %s853_s2 = inlined_call_operand.hbm [shape: f32[1,256], index: 2, kind: input, shape index: {}]   ;;  %s854_s3 = inlined_call_operand.hbm [shape: bf16[128,128], index: 3, kind: input, shape index: {}]   ;;  %s855_s4 = inlined_call_operand.vmem [shape: f32[1,128], index: 4, kind: input, shape index: {}]   ;;  %s856_s5 = inlined_call_operand.hbm [shape: bf16[128,128], index: 5, kind: input, shape index: {}]   ;;  %s857_s6 = inlined_call_operand.vmem [shape: f32[1,128], index: 6, kind: input, shape index: {}]   ;;  %s858_s7 = inlined_call_operand.hbm [shape: f32[16,128], index: 7, kind: output, shape index: {}]  }
   0x1   :  { %13 = vsyncpa [#allocation6], 0 }
   0x2   :  { %14 = vsyncpa [#allocation9], 0  ;;  %s33_s26 = sshll.u32 %s852_s1, 4  ;;  %s34_s26 = int_to_ptr.hbm [resolvable:$true] %s33_s26 }
   0x3   :  { %15 = vsyncpa [#allocation4], 0  ;;  %s767_s27 = smov [#allocation5]   ;;  %s768_s29 = smov 128  }
   0x4   :  { %s35_s28 = sshll.u32 %s767_s27, 4  ;;  %s769_s30 = smov 8   ;;  %s36_s28 = int_to_ptr.vmem [resolvable:$true] %s35_s28 }
   0x5   :  { %41 = dma.hbm_to_vmem [thread:$0]  %s34_s26, 2048, %s36_s28, [#allocation6], %s768_s29, %s768_s29, %s769_s30  }
   0x6   :  { %s57_s10 = sshll.u32 %s854_s3, 4  ;;  %s770_s11 = smov [#allocation8]   ;;  %s58_s10 = int_to_ptr.hbm [resolvable:$true] %s57_s10 }
   0x7   :  { %s59_s12 = sshll.u32 %s770_s11, 4  ;;  %s20_s14 = sshll.u32 %s851_s0, 4  ;;  %s60_s12 = int_to_ptr.vmem [resolvable:$true] %s59_s12  ;;  %s21_s14 = int_to_ptr.hbm [resolvable:$true] %s20_s14 }
   0x8   :  { %s771_s15 = smov 64   ;;  %s772_s16 = smov 4  }
   0x9   :  { %65 = dma.hbm_to_vmem [thread:$0]  %s58_s10, 1024, %s60_s12, [#allocation9], %s771_s15, %s771_s15, %s772_s16  }
   0xa   :  { %s47_s19 = sshll.u32 %s853_s2, 4  ;;  %s773_s20 = smov [#allocation2]   ;;  %s48_s19 = int_to_ptr.hbm [resolvable:$true] %s47_s19 }
   0xb   :  { %s22_s21 = sshll.u32 %s773_s20, 4  ;;  %s774_s3 = smov [#allocation7]   ;;  %s23_s21 = int_to_ptr.vmem [resolvable:$true] %s22_s21 }
   0xc   :  { %28 = dma.hbm_to_vmem [thread:$0]  %s21_s14, 128, %s23_s21, [#allocation3], %s771_s15, %s771_s15, %s772_s16  }
   0xd   :  { %s49_s22 = sshll.u32 %s774_s3, 4  ;;  %s72_s0 = sshll.u32 %s856_s5, 4  ;;  %s50_s22 = int_to_ptr.vmem [resolvable:$true] %s49_s22  ;;  %s73_s0 = int_to_ptr.hbm [resolvable:$true] %s72_s0 }
   0xe   :  { %52 = dma.hbm_to_vmem [thread:$0]  %s48_s19, 32, %s50_s22, [#allocation6]  }
   0xf   :  { %s775_s25 = smov [#allocation10]  }
  0x10   :  { %s74_s26 = sshll.u32 %s775_s25, 4  ;;  %s75_s26 = int_to_ptr.vmem [resolvable:$true] %s74_s26 }
  0x11   :  { %80 = dma.hbm_to_vmem [thread:$0]  %s73_s0, 1024, %s75_s26, [#allocation9], %s771_s15, %s771_s15, %s772_s16  }
  0x12   :  { %759 = dma.done.wait [#allocation3], 128  }
  0x13   :  { %760 = vsyncadd [#allocation3], 4294967168 }
  0x14   :  { %761 = dma.done.wait [#allocation6], 2080  }
  0x15   :  { %762 = vsyncadd [#allocation6], 4294965216 }
  0x16   :  { %763 = dma.done.wait [#allocation9], 2048  }
  0x17   :  { %764 = vsyncadd [#allocation9], 4294965248  ;;  %v500_v0 = vld [vmem:[#allocation5 + $0x70] sm:$0xf]  ;;  %v586_v1 = vld [vmem:[#allocation5 + $0x74] sm:$0xf0] }
  0x18   :  { %v492_v2 = vld [vmem:[#allocation5 + $0x60] sm:$0xf]  ;;  %v501_v3 = vor.u32 %v586_v1, %v500_v0  ;;  %v584_v4 = vld [vmem:[#allocation5 + $0x64] sm:$0xf0]  ;;  %v484_v6 = vld [vmem:[#allocation5 + $0x50] sm:$0xf] }
  0x19   :  { %v493_v5 = vor.u32 %v584_v4, %v492_v2  ;;  %v582_v7 = vld [vmem:[#allocation5 + $0x54] sm:$0xf0]  ;;  %v476_v11 = vld [vmem:[#allocation5 + $0x40] sm:$0xf]  ;;  %v580_v12 = vld [vmem:[#allocation5 + $0x44] sm:$0xf0] }
  0x1a   :  { %213 = vmatpush.bf16.msra.mxu0 %v501_v3  ;;  %v594_v8 = vld [vmem:[#allocation8 + $0x38] sm:$0xff]  ;;  %v485_v9 = vor.u32 %v582_v7, %v484_v6  ;;  %v593_v10 = vld [vmem:[#allocation8 + $0x30] sm:$0xff]  ;;  %v477_v13 = vor.u32 %v580_v12, %v476_v11  ;;  %v592_v14 = vld [vmem:[#allocation8 + $0x28] sm:$0xff]  ;;  %s423_s11 = sshll.u32 %s858_s7, 4  ;;  %s424_s11 = int_to_ptr.hbm [resolvable:$true] %s423_s11 }
  0x1b   :  { %312 = vmatpush.bf16.msra.mxu2 %v594_v8  ;;  %v468_v15 = vld [vmem:[#allocation5 + $0x30] sm:$0xf]  ;;  %v578_v16 = vld [vmem:[#allocation5 + $0x34] sm:$0xf0]  ;;  %v591_v18 = vld [vmem:[#allocation8 + $0x20] sm:$0xff] }
  0x1c   :  { %v469_v17 = vor.u32 %v578_v16, %v468_v15  ;;  %v460_v19 = vld [vmem:[#allocation5 + $0x20] sm:$0xf]  ;;  %v576_v20 = vld [vmem:[#allocation5 + $0x24] sm:$0xf0]  ;;  %v452_v22 = vld [vmem:[#allocation5 + $0x10] sm:$0xf] }
  0x1d   :  { %v461_v21 = vor.u32 %v576_v20, %v460_v19  ;;  %v574_v23 = vld [vmem:[#allocation5 + $0x14] sm:$0xf0]  ;;  %v444_v25 = vld [vmem:[#allocation5] sm:$0xf]  ;;  %v572_v26 = vld [vmem:[#allocation5 + $0x4] sm:$0xf0] }
  0x1e   :  { %214 = vmatpush.bf16.msra.mxu0 %v493_v5  ;;  %v453_v24 = vor.u32 %v574_v23, %v452_v22  ;;  %v445_v27 = vor.u32 %v572_v26, %v444_v25  ;;  %v835_v28 = vld [vmem:[#allocation2] sm:$0xff]  ;;  %v588_v31 = vld [vmem:[#allocation8 + $0x8] sm:$0xff]  ;;  %v587_v32 = vld [vmem:[#allocation8] sm:$0xff] }
  0x1f   :  { %313 = vmatpush.bf16.msra.mxu2 %v593_v10  ;;  %v590_v29 = vld [vmem:[#allocation8 + $0x18] sm:$0xff]  ;;  %v589_v30 = vld [vmem:[#allocation8 + $0x10] sm:$0xff]  ;;  %v583_v37 = vld [vmem:[#allocation5 + $0x64] sm:$0xf] }
  0x20   :  { %v585_v33 = vld [vmem:[#allocation5 + $0x74] sm:$0xf]  ;;  %v502_v34 = vld [vmem:[#allocation5 + $0x78] sm:$0xf0]  ;;  %v494_v38 = vld [vmem:[#allocation5 + $0x68] sm:$0xf0] }
  0x21   :  { %v602_v35 = vld [vmem:[#allocation10 + $0x38] sm:$0xff]  ;;  %v505_v36 = vor.u32 %v585_v33, %v502_v34  ;;  %v601_v39 = vld [vmem:[#allocation10 + $0x30] sm:$0xff]  ;;  %v497_v40 = vor.u32 %v583_v37, %v494_v38  ;;  %v600_v43 = vld [vmem:[#allocation10 + $0x28] sm:$0xff] }
  0x22   :  { %215 = vmatpush.bf16.msra.mxu0 %v485_v9  ;;  %397 = vmatpush.bf16.msra.mxu3 %v602_v35  ;;  %v581_v41 = vld [vmem:[#allocation5 + $0x54] sm:$0xf]  ;;  %v486_v42 = vld [vmem:[#allocation5 + $0x58] sm:$0xf0]  ;;  %v579_v45 = vld [vmem:[#allocation5 + $0x44] sm:$0xf] }
  0x23   :  { %314 = vmatpush.bf16.msra.mxu2 %v592_v14  ;;  %227 = vmatpush.bf16.msra.mxu1 %v505_v36  ;;  %v489_v44 = vor.u32 %v581_v41, %v486_v42  ;;  %v478_v46 = vld [vmem:[#allocation5 + $0x48] sm:$0xf0]  ;;  %v599_v47 = vld [vmem:[#allocation10 + $0x20] sm:$0xff]  ;;  %v577_v49 = vld [vmem:[#allocation5 + $0x34] sm:$0xf] }
  0x24   :  { %v481_v48 = vor.u32 %v579_v45, %v478_v46  ;;  %v470_v50 = vld [vmem:[#allocation5 + $0x38] sm:$0xf0]  ;;  %v121_v52 = vld [vmem:[#allocation7] sm:$0x3]  ;;  %v575_v62 = vld [vmem:[#allocation5 + $0x24] sm:$0xf] }
  0x25   :  { %v473_v51 = vor.u32 %v577_v49, %v470_v50  ;;  %v123_v54 = vperm.slane %v121_v52, 0  ;;  %v598_v61 = vld [vmem:[#allocation10 + $0x18] sm:$0xff]  ;;  %v462_v63 = vld [vmem:[#allocation5 + $0x28] sm:$0xf0]  ;;  %v597_v1 = vld [vmem:[#allocation10 + $0x10] sm:$0xff] }
  0x26   :  { %216 = vmatpush.bf16.msra.mxu0 %v477_v13  ;;  %398 = vmatpush.bf16.msra.mxu3 %v601_v39  ;;  %v465_v0 = vor.u32 %v575_v62, %v462_v63  ;;  %v573_v2 = vld [vmem:[#allocation5 + $0x14] sm:$0xf]  ;;  %v454_v3 = vld [vmem:[#allocation5 + $0x18] sm:$0xf0]  ;;  %v596_v5 = vld [vmem:[#allocation10 + $0x8] sm:$0xff] }
  0x27   :  { %315 = vmatpush.bf16.msra.mxu2 %v591_v18  ;;  %228 = vmatpush.bf16.msra.mxu1 %v497_v40  ;;  %v457_v4 = vor.u32 %v573_v2, %v454_v3  ;;  %v571_v6 = vld [vmem:[#allocation5 + $0x4] sm:$0xf]  ;;  %v446_v7 = vld [vmem:[#allocation5 + $0x8] sm:$0xf0]  ;;  %v613_v11 = vld [vmem:[%s855_s4] ss:$0 sm:$0xff] }
  0x28   :  { %v449_v8 = vor.u32 %v571_v6, %v446_v7  ;;  %v595_v9 = vld [vmem:[#allocation10] sm:$0xff]  ;;  %v124_v18 = vperm.slane %v121_v52, 1  ;;  %v614_v19 = vld [vmem:[%s857_s6] ss:$0 sm:$0xff]  ;;  %s776_s4 = smov [#allocation11]  }
  0x29   :  { %s421_s8 = sshll.u32 %s776_s4, 4  ;;  %s422_s8 = int_to_ptr.vmem [resolvable:$true] %s421_s8 }
  0x2a   :  { %217 = vmatpush.bf16.msra.mxu0 %v469_v17  ;;  %399 = vmatpush.bf16.msra.mxu3 %v600_v43 }
  0x2b   :  { %316 = vmatpush.bf16.msra.mxu2 %v590_v29  ;;  %229 = vmatpush.bf16.msra.mxu1 %v489_v44 }
  0x2e   :  { %218 = vmatpush.bf16.msra.mxu0 %v461_v21  ;;  %400 = vmatpush.bf16.msra.mxu3 %v599_v47 }
  0x2f   :  { %317 = vmatpush.bf16.msra.mxu2 %v589_v30  ;;  %230 = vmatpush.bf16.msra.mxu1 %v481_v48 }
  0x32   :  { %219 = vmatpush.bf16.msra.mxu0 %v453_v24  ;;  %401 = vmatpush.bf16.msra.mxu3 %v598_v61 }
  0x33   :  { %318 = vmatpush.bf16.msra.mxu2 %v588_v31  ;;  %231 = vmatpush.bf16.msra.mxu1 %v473_v51 }
  0x36   :  { %220 = vmatpush.bf16.msra.mxu0 %v445_v27  ;;  %402 = vmatpush.bf16.msra.mxu3 %v597_v1 }
  0x37   :  { %319 = vmatpush.bf16.msra.mxu2 %v587_v32  ;;  %232 = vmatpush.bf16.msra.mxu1 %v465_v0 }
  0x39   :  { %221 = vmatmul.bf16.vlgmr.msra.gmra.mxu0 %v835_v28 }
  0x3a   :  { %403 = vmatpush.bf16.msra.mxu3 %v596_v5 }
  0x3b   :  { %233 = vmatpush.bf16.msra.mxu1 %v457_v4 }
  0x3e   :  { %404 = vmatpush.bf16.msra.mxu3 %v595_v9 }
  0x3f   :  { %234 = vmatpush.bf16.msra.mxu1 %v449_v8 }
  0x42   :  { %235 = vmatmul.bf16.vlgmr.msra.gmra.mxu1 %v835_v28 }
  0xb6   :  { %v222_v53 = vpop.f32.mrf.mxu0 }
  0xb7   :  { %v223_v55 = vadd.f32 %v222_v53, %v123_v54 }
  0xb9   :  { %v241_v58 = vmax.f32 %v223_v55, 0.0 }
  0xbe   :  { %v224_v56 = vpop.f32.mrf.mxu0 }
  0xbf   :  { %v225_v57 = vadd.f32 %v224_v56, %v123_v54  ;;  %v236_v20 = vpop.f32.mrf.mxu1 }
  0xc0   :  { %v237_v22 = vadd.f32 %v236_v20, %v124_v18 }
  0xc1   :  { %v242_v59 = vmax.f32 %v225_v57, 0.0 }
  0xc3   :  { %v243_v60 = vpack.c.bf16 %v242_v59, %v241_v58 }
  0xc5   :  { %320 = vmatmul.bf16.vlgmr.msra.gmra.mxu2 %v243_v60 }
  0xc7   :  { %v238_v26 = vpop.f32.mrf.mxu1 }
  0xc8   :  { %v239_v29 = vadd.f32 %v238_v26, %v124_v18 }
 0x148   :  { %v321_v10 = vpop.f32.mrf.mxu2 }
 0x149   :  { %v322_v12 = vadd.f32 %v613_v11, %v321_v10 }
 0x14b   :  { %v326_v15 = vmax.f32 %v322_v12, 0.0 }
 0x150   :  { %v323_v13 = vpop.f32.mrf.mxu2 }
 0x151   :  { %v324_v14 = vadd.f32 %v613_v11, %v323_v13 }
 0x153   :  { %v327_v16 = vmax.f32 %v324_v14, 0.0 }
 0x155   :  { %v328_v17 = vpack.c.bf16 %v327_v16, %v326_v15 }
 0x157   :  { %405 = vmatmul.bf16.vlgmr.msra.gmra.mxu3 %v328_v17 }
 0x1da   :  { %v406_v21 = vpop.f32.mrf.mxu3 }
 0x1db   :  { %v407_v23 = vadd.f32 %v614_v19, %v406_v21 }
 0x1dd   :  { %v411_v24 = vmax.f32 %v407_v23, 0.0 }
 0x1df   :  { %v413_v25 = vadd.f32 %v411_v24, %v237_v22 }
 0x1e1   :  { %415 = vst [vmem:[#allocation11] sm:$0xff] %v413_v25 }
 0x1e2   :  { %v408_v27 = vpop.f32.mrf.mxu3 }
 0x1e3   :  { %v409_v28 = vadd.f32 %v614_v19, %v408_v27 }
 0x1e5   :  { %v412_v30 = vmax.f32 %v409_v28, 0.0 }
 0x1e7   :  { %v414_v31 = vadd.f32 %v412_v30, %v239_v29 }
 0x1e9   :  { %416 = vst [vmem:[#allocation11 + $0x8] sm:$0xff] %v414_v31 }
 0x1ea   :  { %429 = dma.vmem_to_hbm [thread:$0]  %s422_s8, 256, %s424_s11, [#allocation4], %s768_s29, %s768_s29, %s769_s30  }
 0x1eb   :  { %765 = dma.done.wait [#allocation4], 256  }
 0x1ec   :  { %766 = vsyncadd [#allocation4], 4294967040 }
 0x1ed   :  { %434 = vsyncpa [#allocation3], 1 }
 0x1ee   :  { %435 = vsyncpa [#allocation6], 1 }
 0x1ef   :  { %436 = vsyncpa [#allocation9], 1 }
 0x1f0   :  { %437 = vsyncpa [#allocation4], 1 }

</bundles_post_ra>
